<compile_context>
chip_gen: v7x
topology: tpu7x:2x2x1
jax: 0.10.0
libtpu: 0.0.40
codegen_flags: <defaults>
</compile_context>

<pallas_src>
import math

import jax
import jax.numpy as jnp
import numpy as np
from jax.experimental import pallas as pl
from jax.experimental.pallas import tpu as pltpu


def _bilstm_kernel(x_ref, wih_ref, whh_ref, b_ref, out_ref, hn_ref, gx_scr):
    """Fused bidirectional LSTM, whole sequence resident in VMEM.

    x_ref:   (T*Bp, 2I)   fwd features | time-flipped rev features
    wih_ref: (2I, 8H)     block-structured fused input weight
    whh_ref: (2H, 8H)     block-diagonal fused recurrent weight
    b_ref:   (1, 8H)      fused bias (b_ih + b_hh per direction)
    out_ref: (T*Bp, 2H)   time-ALIGNED hidden states [h_f(t) | h_r(T-1-t)]
    hn_ref:  (Bp, 2H)     final hidden states [h_f(T-1) | h_r(0)]
    gx_scr:  (T*Bp, 8H)   time-aligned input projections (scratch)
    Gate column layout: [i_f|i_r | f_f|f_r | o_f|o_r | g_f|g_r].
    """
    TB, G = gx_scr.shape
    H = G // 8
    Bp = hn_ref.shape[0]
    T = TB // Bp

    # One bulk MXU pass: time-aligned gate pre-activations for both directions.
    gx_scr[...] = (
        jnp.dot(x_ref[...], wih_ref[...], preferred_element_type=jnp.float32)
        + b_ref[...]
    )

    # Hoist loop-invariant weight load out of the recurrence.
    whh = whh_ref[...]                                     # (2H, 8H)

    def step(t, carry):
        h_cat, c_cat = carry                               # (Bp, 2H) each: [fwd | rev]
        row = pl.multiple_of(t * Bp, Bp)
        gates = gx_scr[pl.ds(row, Bp), :] + jnp.dot(
            h_cat, whh, preferred_element_type=jnp.float32)
        # tanh lanes are the trailing 2H; sigmoid on the leading 6H.
        sig = jax.nn.sigmoid(gates[:, 0:6 * H])
        g = jnp.tanh(gates[:, 6 * H:8 * H])
        i = sig[:, 0:2 * H]
        f = sig[:, 2 * H:4 * H]
        o = sig[:, 4 * H:6 * H]
        c_new = f * c_cat + i * g
        h_new = o * jnp.tanh(c_new)
        # Single lane-dense store per step (time-aligned; rev half un-flipped
        # by the wrapper).
        out_ref[pl.ds(row, Bp), :] = h_new
        return h_new, c_new

    h0 = jnp.zeros((Bp, 2 * H), jnp.float32)
    c0 = jnp.zeros((Bp, 2 * H), jnp.float32)
    h_fin, _ = jax.lax.fori_loop(0, T, step, (h0, c0), unroll=min(T, 8))

    hn_ref[...] = h_fin


def _prep_weights(params, H):
    """Fused weights in gate order [i|f|o|g], direction-interleaved columns."""
    I = params["w_ih_f"].shape[1]
    perm = jnp.array([0, 1, 3, 2])        # torch [i,f,g,o] -> kernel [i,f,o,g]

    def gates_of(w, rows):
        # (4H, rows) torch weight -> (rows, 4, H), kernel gate order.
        wt = jnp.transpose(w).reshape(rows, 4, H)
        return wt[:, perm, :]

    def interleave(f4, r4):
        # (..., 4, H) x2 -> (..., 8H): column = 2*gate*H + dir*H + h.
        stacked = jnp.stack([f4, r4], axis=-2)             # (..., 4, 2, H)
        return stacked.reshape(*f4.shape[:-2], 8 * H)

    wih_f = gates_of(params["w_ih_f"], I)
    wih_r = gates_of(params["w_ih_r"], I)
    zI = jnp.zeros_like(wih_f)
    # rows 0:I hit only fwd lanes (fed x[t]); rows I:2I hit only rev lanes
    # (fed x[T-1-t]) -> the projection comes out already time-aligned.
    wih = jnp.concatenate([interleave(wih_f, zI), interleave(zI, wih_r)], axis=0)

    whh_f = gates_of(params["w_hh_f"], H)
    whh_r = gates_of(params["w_hh_r"], H)
    zH = jnp.zeros_like(whh_f)
    whh = jnp.concatenate([interleave(whh_f, zH), interleave(zH, whh_r)], axis=0)

    b_f = (params["b_ih_f"] + params["b_hh_f"]).reshape(4, H)[perm]
    b_r = (params["b_ih_r"] + params["b_hh_r"]).reshape(4, H)[perm]
    b = interleave(b_f, b_r).reshape(1, 8 * H)
    return wih, whh, b


def bilstm_pallas(x, params):
    """x: (B, T, I) batch-first.  Returns (out (B,T,2H), hn (2,B,H))."""
    B, T, I = x.shape
    H = params["w_hh_f"].shape[1]
    G = 8 * H

    # Pad batch to a multiple of 8 so every vreg in the recurrence is full.
    Bp = ((B + 7) // 8) * 8
    x_p = jnp.pad(x.astype(jnp.float32), ((0, Bp - B), (0, 0), (0, 0)))

    x_tm = jnp.transpose(x_p, (1, 0, 2))                   # (T, Bp, I)
    x_fwd = x_tm.reshape(T * Bp, I)
    x_rev = x_tm[::-1].reshape(T * Bp, I)                  # time-flipped
    x_al = jnp.concatenate([x_fwd, x_rev], axis=-1)        # (T*Bp, 2I)

    wih, whh, b = _prep_weights(params, H)

    # Explicit VMEM budget (whole-sequence residency; gx_scr dominates).
    vmem_bytes = 4 * (T * Bp * (2 * I + G + 2 * H)
                      + 2 * I * G + 2 * H * G + G + Bp * 2 * H)
    vmem_limit = int(min(64 << 20, max(16 << 20, 2 * vmem_bytes + (2 << 20))))

    vmem = pl.BlockSpec(memory_space=pltpu.MemorySpace.VMEM)
    out_al, hn_cat = pl.pallas_call(
        _bilstm_kernel,
        out_shape=(jax.ShapeDtypeStruct((T * Bp, 2 * H), jnp.float32),
                   jax.ShapeDtypeStruct((Bp, 2 * H), jnp.float32)),
        in_specs=[vmem] * 4,
        out_specs=(vmem, vmem),
        scratch_shapes=[
            pltpu.VMEM((T * Bp, G), jnp.float32),   # time-aligned projections
        ],
        compiler_params=pltpu.CompilerParams(vmem_limit_bytes=vmem_limit),
    )(x_al, wih, whh, b)

    # Un-align: forward half is already in true time order; reverse half was
    # produced at aligned step t == true time T-1-t, so flip it once here.
    out_al = out_al.reshape(T, Bp, 2 * H)
    out_tm = jnp.concatenate([out_al[:, :, :H], out_al[::-1, :, H:]], axis=-1)
    out = jnp.transpose(out_tm, (1, 0, 2))[:B]             # (B, T, 2H)

    hn = jnp.stack([hn_cat[:B, :H], hn_cat[:B, H:]], axis=0)   # (2, B, H)
    return out, hn


def lstm_rnn_forward(x, params, pool=True):
    """Mirrors LSTM_rnn.forward (bidirection=True, num_layers=1)."""
    B, T, _ = x.shape
    H = params["w_hh_f"].shape[1]
    out, hn = bilstm_pallas(x, params)
    if pool:
        # Replicates PyTorch `out.view(batch, hidden, seq)` — a memory
        # reinterpretation (NOT a transpose) — then AdaptiveAvgPool1d(1)
        # and Flatten(1, -1) -> (B, 2H).
        flat = out.reshape(B, T * 2 * H)
        pooled = flat.reshape(B, 2 * H, T).mean(axis=-1)
        return pooled
    else:
        # out = hn ; Flatten(1, -1) -> (num_layers*D, B*H)
        return hn.reshape(2, B * H)


# ------------------------- pure-JAX reference -------------------------------
def _lstm_ref(x, params):
    B, T, I = x.shape
    H = params["w_hh_f"].shape[1]

    def cell(h, c, xt, w_ih, w_hh, b_ih, b_hh):
        g = xt @ w_ih.T + b_ih + h @ w_hh.T + b_hh
        i, f, gg, o = jnp.split(g, 4, axis=-1)
        i, f, o = jax.nn.sigmoid(i), jax.nn.sigmoid(f), jax.nn.sigmoid(o)
        gg = jnp.tanh(gg)
        c = f * c + i * gg
        h = o * jnp.tanh(c)
        return h, c

    hf = jnp.zeros((B, H), jnp.float32)
    cf = jnp.zeros((B, H), jnp.float32)
    outs_f = []
    for t in range(T):
        hf, cf = cell(hf, cf, x[:, t, :], params["w_ih_f"], params["w_hh_f"],
                      params["b_ih_f"], params["b_hh_f"])
        outs_f.append(hf)

    hr = jnp.zeros((B, H), jnp.float32)
    cr = jnp.zeros((B, H), jnp.float32)
    outs_r = [None] * T
    for t in reversed(range(T)):
        hr, cr = cell(hr, cr, x[:, t, :], params["w_ih_r"], params["w_hh_r"],
                      params["b_ih_r"], params["b_hh_r"])
        outs_r[t] = hr

    out = jnp.concatenate([jnp.stack(outs_f, 1), jnp.stack(outs_r, 1)], axis=-1)
    hn = jnp.stack([hf, hr], axis=0)
    return out, hn


def _ref_forward(x, params, pool=True):
    B, T, _ = x.shape
    H = params["w_hh_f"].shape[1]
    out, hn = _lstm_ref(x, params)
    if pool:
        return out.reshape(B, T * 2 * H).reshape(B, 2 * H, T).mean(axis=-1)
    return hn.reshape(2, B * H)


# ------------------------------- demo ----------------------------------------
def _init_params(key, in_size, hidden):
    k = 1.0 / math.sqrt(hidden)
    ks = jax.random.split(key, 8)
    u = lambda kk, shape: jax.random.uniform(kk, shape, jnp.float32, -k, k)
    return {
        "w_ih_f": u(ks[0], (4 * hidden, in_size)),
        "w_hh_f": u(ks[1], (4 * hidden, hidden)),
        "b_ih_f": u(ks[2], (4 * hidden,)),
        "b_hh_f": u(ks[3], (4 * hidden,)),
        "w_ih_r": u(ks[4], (4 * hidden, in_size)),
        "w_hh_r": u(ks[5], (4 * hidden, hidden)),
        "b_ih_r": u(ks[6], (4 * hidden,)),
        "b_hh_r": u(ks[7], (4 * hidden,)),
    }


if __name__ == "__main__":
    # LSTM_rnn(in_size=16, hidden=32, bidirection=True, num_layers=1,
    #          batch_size=4, pool=True)
    B, T, I, H = 4, 8, 16, 32

    root = jax.random.PRNGKey(0)
    kx, kp = jax.random.split(root)
    x = jax.random.normal(kx, (B, T, I), jnp.float32)   # batch_first input
    params = _init_params(kp, I, H)

    y = lstm_rnn_forward(x, params, pool=True)
    y = jax.block_until_ready(y)
    assert y.shape == (B, 2 * H)

    y_ref = _ref_forward(x, params, pool=True)
    np.testing.assert_allclose(np.asarray(y), np.asarray(y_ref),
                               rtol=1e-5, atol=1e-5)

    # also exercise the pool=False branch (out = hn, flattened)
    y2 = jax.block_until_ready(lstm_rnn_forward(x, params, pool=False))
    np.testing.assert_allclose(np.asarray(y2),
                               np.asarray(_ref_forward(x, params, pool=False)),
                               rtol=1e-5, atol=1e-5)

    print("KERNEL_OK")
</pallas_src>

<mosaic_0001>
module attributes {stable_mosaic.version = 11 : i64} {
  func.func @_bilstm_kernel(%arg0: memref<64x32xf32, #tpu.memory_space<vmem>>, %arg1: memref<32x256xf32, #tpu.memory_space<vmem>>, %arg2: memref<64x256xf32, #tpu.memory_space<vmem>>, %arg3: memref<1x256xf32, #tpu.memory_space<vmem>>, %arg4: memref<64x64xf32, #tpu.memory_space<vmem>>, %arg5: memref<8x64xf32, #tpu.memory_space<vmem>>, %arg6: memref<64x256xf32, #tpu.memory_space<vmem>>) attributes {dimension_semantics = [], scalar_prefetch = 0 : i64, scratch_operands = 1 : i64, tpu.core_type = #tpu.core_type<tc>} {
    %c0 = arith.constant 0 : index
    %c0_0 = arith.constant 0 : index
    %0 = vector.load %arg0[%c0, %c0_0] : memref<64x32xf32, #tpu.memory_space<vmem>>, vector<64x32xf32>
    %c0_1 = arith.constant 0 : index
    %c0_2 = arith.constant 0 : index
    %1 = vector.load %arg1[%c0_1, %c0_2] : memref<32x256xf32, #tpu.memory_space<vmem>>, vector<32x256xf32>
    %cst = arith.constant dense<0.000000e+00> : vector<64x256xf32>
    %2 = tpu.matmul %0, %1, %cst {dimension_numbers = #tpu.dot_dimension_numbers<[1], [0], [0], [1], [0, 0, 1, 1], [], []>} : vector<64x32xf32>, vector<32x256xf32>, vector<64x256xf32> -> vector<64x256xf32>
    %c0_3 = arith.constant 0 : index
    %c0_4 = arith.constant 0 : index
    %3 = vector.load %arg3[%c0_3, %c0_4] : memref<1x256xf32, #tpu.memory_space<vmem>>, vector<1x256xf32>
    %4 = vector.broadcast %3 : vector<1x256xf32> to vector<64x256xf32>
    %5 = arith.addf %2, %4 : vector<64x256xf32>
    %c0_5 = arith.constant 0 : index
    %c0_6 = arith.constant 0 : index
    %6 = vector.load %arg6[%c0_5, %c0_6] : memref<64x256xf32, #tpu.memory_space<vmem>>, vector<64x256xf32>
    tpu.vector_store %arg6[%c0_5, %c0_6], %5 {strides = array<i32>} : memref<64x256xf32, #tpu.memory_space<vmem>>, vector<64x256xf32>,
    %c0_7 = arith.constant 0 : index
    %c0_8 = arith.constant 0 : index
    %7 = vector.load %arg2[%c0_7, %c0_8] : memref<64x256xf32, #tpu.memory_space<vmem>>, vector<64x256xf32>
    %cst_9 = arith.constant 0.000000e+00 : f32
    %8 = vector.broadcast %cst_9 : f32 to vector<8x64xf32>
    %cst_10 = arith.constant 0.000000e+00 : f32
    %9 = vector.broadcast %cst_10 : f32 to vector<8x64xf32>
    %c0_i32 = arith.constant 0 : i32
    %c8_i32 = arith.constant 8 : i32
    %10 = arith.muli %c0_i32, %c8_i32 : i32
    %11 = tpu.assume_multiple %10, 8 : i32
    %12 = arith.index_cast %11 : i32 to index
    %c0_11 = arith.constant 0 : index
    %13 = vector.load %arg6[%12, %c0_11] : memref<64x256xf32, #tpu.memory_space<vmem>>, vector<8x256xf32>
    %cst_12 = arith.constant dense<0.000000e+00> : vector<8x256xf32>
    %14 = tpu.matmul %8, %7, %cst_12 {dimension_numbers = #tpu.dot_dimension_numbers<[1], [0], [0], [1], [0, 0, 1, 1], [], []>} : vector<8x64xf32>, vector<64x256xf32>, vector<8x256xf32> -> vector<8x256xf32>
    %15 = arith.addf %13, %14 : vector<8x256xf32>
    %16 = vector.extract_strided_slice %15 {offsets = [0, 0], sizes = [8, 192], strides = [1, 1]} : vector<8x256xf32> to vector<8x192xf32>
    %17 = arith.negf %16 : vector<8x192xf32>
    %18 = math.exp %17 : vector<8x192xf32>
    %cst_13 = arith.constant 1.000000e+00 : f32
    %19 = vector.broadcast %cst_13 : f32 to vector<8x192xf32>
    %20 = arith.addf %19, %18 : vector<8x192xf32>
    %21 = arith.divf %19, %20 : vector<8x192xf32>
    %22 = vector.extract_strided_slice %15 {offsets = [0, 192], sizes = [8, 64], strides = [1, 1]} : vector<8x256xf32> to vector<8x64xf32>
    %23 = math.tanh %22 : vector<8x64xf32>
    %24 = vector.extract_strided_slice %21 {offsets = [0, 0], sizes = [8, 64], strides = [1, 1]} : vector<8x192xf32> to vector<8x64xf32>
    %25 = vector.extract_strided_slice %21 {offsets = [0, 64], sizes = [8, 64], strides = [1, 1]} : vector<8x192xf32> to vector<8x64xf32>
    %26 = vector.extract_strided_slice %21 {offsets = [0, 128], sizes = [8, 64], strides = [1, 1]} : vector<8x192xf32> to vector<8x64xf32>
    %27 = arith.mulf %25, %9 : vector<8x64xf32>
    %28 = arith.mulf %24, %23 : vector<8x64xf32>
    %29 = arith.addf %27, %28 : vector<8x64xf32>
    %30 = math.tanh %29 : vector<8x64xf32>
    %31 = arith.mulf %26, %30 : vector<8x64xf32>
    %32 = arith.index_cast %11 : i32 to index
    %c0_14 = arith.constant 0 : index
    %33 = vector.load %arg4[%32, %c0_14] : memref<64x64xf32, #tpu.memory_space<vmem>>, vector<8x64xf32>
    tpu.vector_store %arg4[%32, %c0_14], %31 {strides = array<i32>} : memref<64x64xf32, #tpu.memory_space<vmem>>, vector<8x64xf32>,
    %c1_i32 = arith.constant 1 : i32
    %c8_i32_15 = arith.constant 8 : i32
    %34 = arith.muli %c1_i32, %c8_i32_15 : i32
    %35 = tpu.assume_multiple %34, 8 : i32
    %36 = arith.index_cast %35 : i32 to index
    %c0_16 = arith.constant 0 : index
    %37 = vector.load %arg6[%36, %c0_16] : memref<64x256xf32, #tpu.memory_space<vmem>>, vector<8x256xf32>
    %cst_17 = arith.constant dense<0.000000e+00> : vector<8x256xf32>
    %38 = tpu.matmul %31, %7, %cst_17 {dimension_numbers = #tpu.dot_dimension_numbers<[1], [0], [0], [1], [0, 0, 1, 1], [], []>} : vector<8x64xf32>, vector<64x256xf32>, vector<8x256xf32> -> vector<8x256xf32>
    %39 = arith.addf %37, %38 : vector<8x256xf32>
    %40 = vector.extract_strided_slice %39 {offsets = [0, 0], sizes = [8, 192], strides = [1, 1]} : vector<8x256xf32> to vector<8x192xf32>
    %41 = arith.negf %40 : vector<8x192xf32>
    %42 = math.exp %41 : vector<8x192xf32>
    %cst_18 = arith.constant 1.000000e+00 : f32
    %43 = vector.broadcast %cst_18 : f32 to vector<8x192xf32>
    %44 = arith.addf %43, %42 : vector<8x192xf32>
    %45 = arith.divf %43, %44 : vector<8x192xf32>
    %46 = vector.extract_strided_slice %39 {offsets = [0, 192], sizes = [8, 64], strides = [1, 1]} : vector<8x256xf32> to vector<8x64xf32>
    %47 = math.tanh %46 : vector<8x64xf32>
    %48 = vector.extract_strided_slice %45 {offsets = [0, 0], sizes = [8, 64], strides = [1, 1]} : vector<8x192xf32> to vector<8x64xf32>
    %49 = vector.extract_strided_slice %45 {offsets = [0, 64], sizes = [8, 64], strides = [1, 1]} : vector<8x192xf32> to vector<8x64xf32>
    %50 = vector.extract_strided_slice %45 {offsets = [0, 128], sizes = [8, 64], strides = [1, 1]} : vector<8x192xf32> to vector<8x64xf32>
    %51 = arith.mulf %49, %29 : vector<8x64xf32>
    %52 = arith.mulf %48, %47 : vector<8x64xf32>
    %53 = arith.addf %51, %52 : vector<8x64xf32>
    %54 = math.tanh %53 : vector<8x64xf32>
    %55 = arith.mulf %50, %54 : vector<8x64xf32>
    %56 = arith.index_cast %35 : i32 to index
    %c0_19 = arith.constant 0 : index
    %57 = vector.load %arg4[%56, %c0_19] : memref<64x64xf32, #tpu.memory_space<vmem>>, vector<8x64xf32>
    tpu.vector_store %arg4[%56, %c0_19], %55 {strides = array<i32>} : memref<64x64xf32, #tpu.memory_space<vmem>>, vector<8x64xf32>,
    %c2_i32 = arith.constant 2 : i32
    %c8_i32_20 = arith.constant 8 : i32
    %58 = arith.muli %c2_i32, %c8_i32_20 : i32
    %59 = tpu.assume_multiple %58, 8 : i32
    %60 = arith.index_cast %59 : i32 to index
    %c0_21 = arith.constant 0 : index
    %61 = vector.load %arg6[%60, %c0_21] : memref<64x256xf32, #tpu.memory_space<vmem>>, vector<8x256xf32>
    %cst_22 = arith.constant dense<0.000000e+00> : vector<8x256xf32>
    %62 = tpu.matmul %55, %7, %cst_22 {dimension_numbers = #tpu.dot_dimension_numbers<[1], [0], [0], [1], [0, 0, 1, 1], [], []>} : vector<8x64xf32>, vector<64x256xf32>, vector<8x256xf32> -> vector<8x256xf32>
    %63 = arith.addf %61, %62 : vector<8x256xf32>
    %64 = vector.extract_strided_slice %63 {offsets = [0, 0], sizes = [8, 192], strides = [1, 1]} : vector<8x256xf32> to vector<8x192xf32>
    %65 = arith.negf %64 : vector<8x192xf32>
    %66 = math.exp %65 : vector<8x192xf32>
    %cst_23 = arith.constant 1.000000e+00 : f32
    %67 = vector.broadcast %cst_23 : f32 to vector<8x192xf32>
    %68 = arith.addf %67, %66 : vector<8x192xf32>
    %69 = arith.divf %67, %68 : vector<8x192xf32>
    %70 = vector.extract_strided_slice %63 {offsets = [0, 192], sizes = [8, 64], strides = [1, 1]} : vector<8x256xf32> to vector<8x64xf32>
    %71 = math.tanh %70 : vector<8x64xf32>
    %72 = vector.extract_strided_slice %69 {offsets = [0, 0], sizes = [8, 64], strides = [1, 1]} : vector<8x192xf32> to vector<8x64xf32>
    %73 = vector.extract_strided_slice %69 {offsets = [0, 64], sizes = [8, 64], strides = [1, 1]} : vector<8x192xf32> to vector<8x64xf32>
    %74 = vector.extract_strided_slice %69 {offsets = [0, 128], sizes = [8, 64], strides = [1, 1]} : vector<8x192xf32> to vector<8x64xf32>
    %75 = arith.mulf %73, %53 : vector<8x64xf32>
    %76 = arith.mulf %72, %71 : vector<8x64xf32>
    %77 = arith.addf %75, %76 : vector<8x64xf32>
    %78 = math.tanh %77 : vector<8x64xf32>
    %79 = arith.mulf %74, %78 : vector<8x64xf32>
    %80 = arith.index_cast %59 : i32 to index
    %c0_24 = arith.constant 0 : index
    %81 = vector.load %arg4[%80, %c0_24] : memref<64x64xf32, #tpu.memory_space<vmem>>, vector<8x64xf32>
    tpu.vector_store %arg4[%80, %c0_24], %79 {strides = array<i32>} : memref<64x64xf32, #tpu.memory_space<vmem>>, vector<8x64xf32>,
    %c3_i32 = arith.constant 3 : i32
    %c8_i32_25 = arith.constant 8 : i32
    %82 = arith.muli %c3_i32, %c8_i32_25 : i32
    %83 = tpu.assume_multiple %82, 8 : i32
    %84 = arith.index_cast %83 : i32 to index
    %c0_26 = arith.constant 0 : index
    %85 = vector.load %arg6[%84, %c0_26] : memref<64x256xf32, #tpu.memory_space<vmem>>, vector<8x256xf32>
    %cst_27 = arith.constant dense<0.000000e+00> : vector<8x256xf32>
    %86 = tpu.matmul %79, %7, %cst_27 {dimension_numbers = #tpu.dot_dimension_numbers<[1], [0], [0], [1], [0, 0, 1, 1], [], []>} : vector<8x64xf32>, vector<64x256xf32>, vector<8x256xf32> -> vector<8x256xf32>
    %87 = arith.addf %85, %86 : vector<8x256xf32>
    %88 = vector.extract_strided_slice %87 {offsets = [0, 0], sizes = [8, 192], strides = [1, 1]} : vector<8x256xf32> to vector<8x192xf32>
    %89 = arith.negf %88 : vector<8x192xf32>
    %90 = math.exp %89 : vector<8x192xf32>
    %cst_28 = arith.constant 1.000000e+00 : f32
    %91 = vector.broadcast %cst_28 : f32 to vector<8x192xf32>
    %92 = arith.addf %91, %90 : vector<8x192xf32>
    %93 = arith.divf %91, %92 : vector<8x192xf32>
    %94 = vector.extract_strided_slice %87 {offsets = [0, 192], sizes = [8, 64], strides = [1, 1]} : vector<8x256xf32> to vector<8x64xf32>
    %95 = math.tanh %94 : vector<8x64xf32>
    %96 = vector.extract_strided_slice %93 {offsets = [0, 0], sizes = [8, 64], strides = [1, 1]} : vector<8x192xf32> to vector<8x64xf32>
    %97 = vector.extract_strided_slice %93 {offsets = [0, 64], sizes = [8, 64], strides = [1, 1]} : vector<8x192xf32> to vector<8x64xf32>
    %98 = vector.extract_strided_slice %93 {offsets = [0, 128], sizes = [8, 64], strides = [1, 1]} : vector<8x192xf32> to vector<8x64xf32>
    %99 = arith.mulf %97, %77 : vector<8x64xf32>
    %100 = arith.mulf %96, %95 : vector<8x64xf32>
    %101 = arith.addf %99, %100 : vector<8x64xf32>
    %102 = math.tanh %101 : vector<8x64xf32>
    %103 = arith.mulf %98, %102 : vector<8x64xf32>
    %104 = arith.index_cast %83 : i32 to index
    %c0_29 = arith.constant 0 : index
    %105 = vector.load %arg4[%104, %c0_29] : memref<64x64xf32, #tpu.memory_space<vmem>>, vector<8x64xf32>
    tpu.vector_store %arg4[%104, %c0_29], %103 {strides = array<i32>} : memref<64x64xf32, #tpu.memory_space<vmem>>, vector<8x64xf32>,
    %c4_i32 = arith.constant 4 : i32
    %c8_i32_30 = arith.constant 8 : i32
    %106 = arith.muli %c4_i32, %c8_i32_30 : i32
    %107 = tpu.assume_multiple %106, 8 : i32
    %108 = arith.index_cast %107 : i32 to index
    %c0_31 = arith.constant 0 : index
    %109 = vector.load %arg6[%108, %c0_31] : memref<64x256xf32, #tpu.memory_space<vmem>>, vector<8x256xf32>
    %cst_32 = arith.constant dense<0.000000e+00> : vector<8x256xf32>
    %110 = tpu.matmul %103, %7, %cst_32 {dimension_numbers = #tpu.dot_dimension_numbers<[1], [0], [0], [1], [0, 0, 1, 1], [], []>} : vector<8x64xf32>, vector<64x256xf32>, vector<8x256xf32> -> vector<8x256xf32>
    %111 = arith.addf %109, %110 : vector<8x256xf32>
    %112 = vector.extract_strided_slice %111 {offsets = [0, 0], sizes = [8, 192], strides = [1, 1]} : vector<8x256xf32> to vector<8x192xf32>
    %113 = arith.negf %112 : vector<8x192xf32>
    %114 = math.exp %113 : vector<8x192xf32>
    %cst_33 = arith.constant 1.000000e+00 : f32
    %115 = vector.broadcast %cst_33 : f32 to vector<8x192xf32>
    %116 = arith.addf %115, %114 : vector<8x192xf32>
    %117 = arith.divf %115, %116 : vector<8x192xf32>
    %118 = vector.extract_strided_slice %111 {offsets = [0, 192], sizes = [8, 64], strides = [1, 1]} : vector<8x256xf32> to vector<8x64xf32>
    %119 = math.tanh %118 : vector<8x64xf32>
    %120 = vector.extract_strided_slice %117 {offsets = [0, 0], sizes = [8, 64], strides = [1, 1]} : vector<8x192xf32> to vector<8x64xf32>
    %121 = vector.extract_strided_slice %117 {offsets = [0, 64], sizes = [8, 64], strides = [1, 1]} : vector<8x192xf32> to vector<8x64xf32>
    %122 = vector.extract_strided_slice %117 {offsets = [0, 128], sizes = [8, 64], strides = [1, 1]} : vector<8x192xf32> to vector<8x64xf32>
    %123 = arith.mulf %121, %101 : vector<8x64xf32>
    %124 = arith.mulf %120, %119 : vector<8x64xf32>
    %125 = arith.addf %123, %124 : vector<8x64xf32>
    %126 = math.tanh %125 : vector<8x64xf32>
    %127 = arith.mulf %122, %126 : vector<8x64xf32>
    %128 = arith.index_cast %107 : i32 to index
    %c0_34 = arith.constant 0 : index
    %129 = vector.load %arg4[%128, %c0_34] : memref<64x64xf32, #tpu.memory_space<vmem>>, vector<8x64xf32>
    tpu.vector_store %arg4[%128, %c0_34], %127 {strides = array<i32>} : memref<64x64xf32, #tpu.memory_space<vmem>>, vector<8x64xf32>,
    %c5_i32 = arith.constant 5 : i32
    %c8_i32_35 = arith.constant 8 : i32
    %130 = arith.muli %c5_i32, %c8_i32_35 : i32
    %131 = tpu.assume_multiple %130, 8 : i32
    %132 = arith.index_cast %131 : i32 to index
    %c0_36 = arith.constant 0 : index
    %133 = vector.load %arg6[%132, %c0_36] : memref<64x256xf32, #tpu.memory_space<vmem>>, vector<8x256xf32>
    %cst_37 = arith.constant dense<0.000000e+00> : vector<8x256xf32>
    %134 = tpu.matmul %127, %7, %cst_37 {dimension_numbers = #tpu.dot_dimension_numbers<[1], [0], [0], [1], [0, 0, 1, 1], [], []>} : vector<8x64xf32>, vector<64x256xf32>, vector<8x256xf32> -> vector<8x256xf32>
    %135 = arith.addf %133, %134 : vector<8x256xf32>
    %136 = vector.extract_strided_slice %135 {offsets = [0, 0], sizes = [8, 192], strides = [1, 1]} : vector<8x256xf32> to vector<8x192xf32>
    %137 = arith.negf %136 : vector<8x192xf32>
    %138 = math.exp %137 : vector<8x192xf32>
    %cst_38 = arith.constant 1.000000e+00 : f32
    %139 = vector.broadcast %cst_38 : f32 to vector<8x192xf32>
    %140 = arith.addf %139, %138 : vector<8x192xf32>
    %141 = arith.divf %139, %140 : vector<8x192xf32>
    %142 = vector.extract_strided_slice %135 {offsets = [0, 192], sizes = [8, 64], strides = [1, 1]} : vector<8x256xf32> to vector<8x64xf32>
    %143 = math.tanh %142 : vector<8x64xf32>
    %144 = vector.extract_strided_slice %141 {offsets = [0, 0], sizes = [8, 64], strides = [1, 1]} : vector<8x192xf32> to vector<8x64xf32>
    %145 = vector.extract_strided_slice %141 {offsets = [0, 64], sizes = [8, 64], strides = [1, 1]} : vector<8x192xf32> to vector<8x64xf32>
    %146 = vector.extract_strided_slice %141 {offsets = [0, 128], sizes = [8, 64], strides = [1, 1]} : vector<8x192xf32> to vector<8x64xf32>
    %147 = arith.mulf %145, %125 : vector<8x64xf32>
    %148 = arith.mulf %144, %143 : vector<8x64xf32>
    %149 = arith.addf %147, %148 : vector<8x64xf32>
    %150 = math.tanh %149 : vector<8x64xf32>
    %151 = arith.mulf %146, %150 : vector<8x64xf32>
    %152 = arith.index_cast %131 : i32 to index
    %c0_39 = arith.constant 0 : index
    %153 = vector.load %arg4[%152, %c0_39] : memref<64x64xf32, #tpu.memory_space<vmem>>, vector<8x64xf32>
    tpu.vector_store %arg4[%152, %c0_39], %151 {strides = array<i32>} : memref<64x64xf32, #tpu.memory_space<vmem>>, vector<8x64xf32>,
    %c6_i32 = arith.constant 6 : i32
    %c8_i32_40 = arith.constant 8 : i32
    %154 = arith.muli %c6_i32, %c8_i32_40 : i32
    %155 = tpu.assume_multiple %154, 8 : i32
    %156 = arith.index_cast %155 : i32 to index
    %c0_41 = arith.constant 0 : index
    %157 = vector.load %arg6[%156, %c0_41] : memref<64x256xf32, #tpu.memory_space<vmem>>, vector<8x256xf32>
    %cst_42 = arith.constant dense<0.000000e+00> : vector<8x256xf32>
    %158 = tpu.matmul %151, %7, %cst_42 {dimension_numbers = #tpu.dot_dimension_numbers<[1], [0], [0], [1], [0, 0, 1, 1], [], []>} : vector<8x64xf32>, vector<64x256xf32>, vector<8x256xf32> -> vector<8x256xf32>
    %159 = arith.addf %157, %158 : vector<8x256xf32>
    %160 = vector.extract_strided_slice %159 {offsets = [0, 0], sizes = [8, 192], strides = [1, 1]} : vector<8x256xf32> to vector<8x192xf32>
    %161 = arith.negf %160 : vector<8x192xf32>
    %162 = math.exp %161 : vector<8x192xf32>
    %cst_43 = arith.constant 1.000000e+00 : f32
    %163 = vector.broadcast %cst_43 : f32 to vector<8x192xf32>
    %164 = arith.addf %163, %162 : vector<8x192xf32>
    %165 = arith.divf %163, %164 : vector<8x192xf32>
    %166 = vector.extract_strided_slice %159 {offsets = [0, 192], sizes = [8, 64], strides = [1, 1]} : vector<8x256xf32> to vector<8x64xf32>
    %167 = math.tanh %166 : vector<8x64xf32>
    %168 = vector.extract_strided_slice %165 {offsets = [0, 0], sizes = [8, 64], strides = [1, 1]} : vector<8x192xf32> to vector<8x64xf32>
    %169 = vector.extract_strided_slice %165 {offsets = [0, 64], sizes = [8, 64], strides = [1, 1]} : vector<8x192xf32> to vector<8x64xf32>
    %170 = vector.extract_strided_slice %165 {offsets = [0, 128], sizes = [8, 64], strides = [1, 1]} : vector<8x192xf32> to vector<8x64xf32>
    %171 = arith.mulf %169, %149 : vector<8x64xf32>
    %172 = arith.mulf %168, %167 : vector<8x64xf32>
    %173 = arith.addf %171, %172 : vector<8x64xf32>
    %174 = math.tanh %173 : vector<8x64xf32>
    %175 = arith.mulf %170, %174 : vector<8x64xf32>
    %176 = arith.index_cast %155 : i32 to index
    %c0_44 = arith.constant 0 : index
    %177 = vector.load %arg4[%176, %c0_44] : memref<64x64xf32, #tpu.memory_space<vmem>>, vector<8x64xf32>
    tpu.vector_store %arg4[%176, %c0_44], %175 {strides = array<i32>} : memref<64x64xf32, #tpu.memory_space<vmem>>, vector<8x64xf32>,
    %c7_i32 = arith.constant 7 : i32
    %c8_i32_45 = arith.constant 8 : i32
    %178 = arith.muli %c7_i32, %c8_i32_45 : i32
    %179 = tpu.assume_multiple %178, 8 : i32
    %180 = arith.index_cast %179 : i32 to index
    %c0_46 = arith.constant 0 : index
    %181 = vector.load %arg6[%180, %c0_46] : memref<64x256xf32, #tpu.memory_space<vmem>>, vector<8x256xf32>
    %cst_47 = arith.constant dense<0.000000e+00> : vector<8x256xf32>
    %182 = tpu.matmul %175, %7, %cst_47 {dimension_numbers = #tpu.dot_dimension_numbers<[1], [0], [0], [1], [0, 0, 1, 1], [], []>} : vector<8x64xf32>, vector<64x256xf32>, vector<8x256xf32> -> vector<8x256xf32>
    %183 = arith.addf %181, %182 : vector<8x256xf32>
    %184 = vector.extract_strided_slice %183 {offsets = [0, 0], sizes = [8, 192], strides = [1, 1]} : vector<8x256xf32> to vector<8x192xf32>
    %185 = arith.negf %184 : vector<8x192xf32>
    %186 = math.exp %185 : vector<8x192xf32>
    %cst_48 = arith.constant 1.000000e+00 : f32
    %187 = vector.broadcast %cst_48 : f32 to vector<8x192xf32>
    %188 = arith.addf %187, %186 : vector<8x192xf32>
    %189 = arith.divf %187, %188 : vector<8x192xf32>
    %190 = vector.extract_strided_slice %183 {offsets = [0, 192], sizes = [8, 64], strides = [1, 1]} : vector<8x256xf32> to vector<8x64xf32>
    %191 = math.tanh %190 : vector<8x64xf32>
    %192 = vector.extract_strided_slice %189 {offsets = [0, 0], sizes = [8, 64], strides = [1, 1]} : vector<8x192xf32> to vector<8x64xf32>
    %193 = vector.extract_strided_slice %189 {offsets = [0, 64], sizes = [8, 64], strides = [1, 1]} : vector<8x192xf32> to vector<8x64xf32>
    %194 = vector.extract_strided_slice %189 {offsets = [0, 128], sizes = [8, 64], strides = [1, 1]} : vector<8x192xf32> to vector<8x64xf32>
    %195 = arith.mulf %193, %173 : vector<8x64xf32>
    %196 = arith.mulf %192, %191 : vector<8x64xf32>
    %197 = arith.addf %195, %196 : vector<8x64xf32>
    %198 = math.tanh %197 : vector<8x64xf32>
    %199 = arith.mulf %194, %198 : vector<8x64xf32>
    %200 = arith.index_cast %179 : i32 to index
    %c0_49 = arith.constant 0 : index
    %201 = vector.load %arg4[%200, %c0_49] : memref<64x64xf32, #tpu.memory_space<vmem>>, vector<8x64xf32>
    tpu.vector_store %arg4[%200, %c0_49], %199 {strides = array<i32>} : memref<64x64xf32, #tpu.memory_space<vmem>>, vector<8x64xf32>,
    %c8_i32_50 = arith.constant 8 : i32
    %c0_51 = arith.constant 0 : index
    %c0_52 = arith.constant 0 : index
    %202 = vector.load %arg5[%c0_51, %c0_52] : memref<8x64xf32, #tpu.memory_space<vmem>>, vector<8x64xf32>
    tpu.vector_store %arg5[%c0_51, %c0_52], %199 {strides = array<i32>} : memref<8x64xf32, #tpu.memory_space<vmem>>, vector<8x64xf32>,
    return
  }
}

</mosaic_0001>

<bundles_post_ra>
// kernel: tpu_custom_call.1
= control target key start
LH: loop header
LB: loop body
LE: loop exit
PB: predicated region body
PF: predicated region fallthrough
CT: control target
= control target key end

     0   :  { %11 = vsyncpa [#allocation4], 0  ;;  %s1880_s0 = inlined_call_operand.vmem [shape: f32[64,32], index: 0, kind: input, shape index: {}]   ;;  %s1881_s1 = inlined_call_operand.vmem [shape: f32[32,256], index: 1, kind: input, shape index: {}]   ;;  %s1882_s2 = inlined_call_operand.hbm [shape: f32[64,256], index: 2, kind: input, shape index: {}]   ;;  %s1883_s3 = inlined_call_operand.vmem [shape: f32[1,256], index: 3, kind: input, shape index: {}]   ;;  %s1884_s4 = inlined_call_operand.hbm [shape: f32[64,64], index: 4, kind: output, shape index: {0}]   ;;  %s1885_s5 = inlined_call_operand.hbm [shape: f32[8,64], index: 5, kind: output, shape index: {1}]  }
   0x1   :  { %12 = vsyncpa [#allocation5], 0 }
   0x2   :  { %13 = vsyncpa [#allocation8], 0  ;;  %s1552_s18 = smov [#allocation3]   ;;  %s1480_s22 = scalar_lea.hbm %s1882_s2, 2048 }
   0x3   :  { %s23_s19 = sshll.u32 %s1552_s18, 4  ;;  %p1481_p0 = scmp.ne.s32.totalorder %s1882_s2, %s1480_s22  ;;  %s24_s19 = int_to_ptr.vmem [resolvable:$true] %s23_s19 }
   0x4   :  { %p1484_p1 = scmp.lt.u32.totalorder %s1480_s22, %s1882_s2 }
   0x6   :  { %p1486_p2 = pnand %p1484_p1, %p1481_p0 }
   0x8   :  { %1489 = shalt.err (!%p1486_p2)
}
   0x9   :  { %s1490_s27 = scalar_lea.vmem %s24_s19, 2048  ;;  %p1495_p4 = scmp.lt.s32.totalorder %s24_s19, %s24_s19 }
   0xa   :  { %p1491_p3 = scmp.ne.s32.totalorder %s24_s19, %s1490_s27  ;;  %p1496_p5 = scmp.lt.s32.totalorder %s1490_s27, %s1490_s27 }
   0xc   :  { %p1497_p6 = por %p1496_p5, %p1495_p4 }
   0xe   :  { %p1498_p7 = pnand %p1497_p6, %p1491_p3 }
  0x10   :  { %1501 = shalt.err (!%p1498_p7)
}
  0x11   :  { %s1553_s28 = smov 256   ;;  %s1554_s29 = smov 16  }
  0x12   :  { %29 = dma.hbm_to_vmem [thread:$0]  %s1882_s2, 2048, %s24_s19, [#allocation4], %s1553_s28, %s1553_s28, %s1554_s29  }
  0x13   :  { %1546 = dma.done.wait [#allocation4], 2048  }
  0x14   :  { %1547 = vsyncadd [#allocation4], 4294965248  ;;  %v1555_v0 = vmov 0.0   ;;  %v44_v1 = vld [vmem:[%s1881_s1 + $0x8] sm:$0xff]  ;;  %v46_v2 = vld [vmem:[%s1881_s1 + $0x18] sm:$0xff]  ;;  %vm63_vm0 = vcmask 261120   ;;  %v53_v49 = vlaneseq }
  0x15   :  { %152 = vmatprep.mubr.f32.mxu1 %v1555_v0  ;;  %644 = vmatprep.mubr.f32.mxu0 %v1555_v0  ;;  %v43_v3 = vld [vmem:[%s1881_s1] sm:$0xff]  ;;  %v1207_v4 = vpack.c.bf16 %v46_v2, %v44_v1  ;;  %v45_v5 = vld [vmem:[%s1881_s1 + $0x10] sm:$0xff]  ;;  %v48_v6 = vld [vmem:[%s1881_s1 + $0x28] sm:$0xff]  ;;  %s1556_s2 = smov 64   ;;  %vm238_vm1 = vcmask 523264   ;;  %s1558_s14 = smov [#allocation7]  }
  0x16   :  { %v50_v7 = vld [vmem:[%s1881_s1 + $0x38] sm:$0xff]  ;;  %v1209_v8 = vpack.c.bf16 %v45_v5, %v43_v3  ;;  %v47_v10 = vld [vmem:[%s1881_s1 + $0x20] sm:$0xff]  ;;  %v49_v11 = vld [vmem:[%s1881_s1 + $0x30] sm:$0xff]  ;;  %v54_v52 = vshrl.u32 %v53_v49, 7  ;;  %s1156_s15 = sshll.u32 %s1558_s14, 4  ;;  %s1847_s15 = int_to_ptr.vmem [resolvable:$true] %s1156_s15 }
  0x17   :  { %v1211_v9 = vpack.c.bf16 %v50_v7, %v48_v6  ;;  %1208 = vmatprep.subr.bf16.mxu1 %v1207_v4  ;;  %v218_v12 = vld [vmem:[#allocation3 + $0x8] sm:$0xff]  ;;  %v220_v13 = vld [vmem:[#allocation3 + $0x18] sm:$0xff]  ;;  %v217_v14 = vld [vmem:[#allocation3] sm:$0xff]  ;;  %v1213_v15 = vpack.c.bf16 %v49_v11, %v47_v10 }
  0x18   :  { %1210 = vmatpush1.bf16.msra.mxu1 %v1209_v8  ;;  %v1629_v16 = vpack.c.bf16 %v220_v13, %v218_v12  ;;  %v219_v17 = vld [vmem:[#allocation3 + $0x10] sm:$0xff]  ;;  %v222_v19 = vld [vmem:[#allocation3 + $0x28] sm:$0xff]  ;;  %v224_v20 = vld [vmem:[#allocation3 + $0x38] sm:$0xff]  ;;  %v59_v55 = vsub.s32 1, %v54_v52  ;;  %v55_v1 = vsub.s32 0, %v54_v52 }
  0x19   :  { %1212 = vmatprep.subr.bf16.mxu1 %v1211_v9  ;;  %v1631_v18 = vpack.c.bf16 %v219_v17, %v217_v14  ;;  %v1633_v21 = vpack.c.bf16 %v224_v20, %v222_v19  ;;  %v221_v22 = vld [vmem:[#allocation3 + $0x20] sm:$0xff]  ;;  %v223_v23 = vld [vmem:[#allocation3 + $0x30] sm:$0xff]  ;;  %v226_v25 = vld [vmem:[#allocation3 + $0x48] sm:$0xff] }
  0x1a   :  { %1264 = vmatprep.subr.bf16.mxu0 %v1629_v16  ;;  %v35_v24 = vld [vmem:[%s1880_s0] sm:$0xff]  ;;  %v228_v26 = vld [vmem:[#allocation3 + $0x58] sm:$0xff]  ;;  %v1642_v27 = vpack.c.bf16 %v223_v23, %v221_v22  ;;  %v227_v29 = vld [vmem:[#allocation3 + $0x50] sm:$0xff] }
  0x1b   :  { %1266 = vmatpush1.bf16.msra.mxu0 %v1631_v18  ;;  %v225_v28 = vld [vmem:[#allocation3 + $0x40] sm:$0xff]  ;;  %v1645_v30 = vpack.c.bf16 %v228_v26, %v226_v25  ;;  %v36_v31 = vld [vmem:[%s1880_s0 + $0x8] sm:$0xff]  ;;  %v232_v33 = vld [vmem:[#allocation3 + $0x78] sm:$0xff] }
  0x1c   :  { %1214 = vmatpush1.bf16.msra.mxu1 %v1213_v15  ;;  %1268 = vmatprep.subr.bf16.mxu0 %v1633_v21  ;;  %v230_v32 = vld [vmem:[#allocation3 + $0x68] sm:$0xff]  ;;  %v1654_v34 = vpack.c.bf16 %v227_v29, %v225_v28  ;;  %v229_v35 = vld [vmem:[#allocation3 + $0x60] sm:$0xff]  ;;  %v231_v36 = vld [vmem:[#allocation3 + $0x70] sm:$0xff] }
  0x1d   :  { %1216 = vmatprep.subr.bf16.mxu1 %v1629_v16  ;;  %v1658_v37 = vpack.c.bf16 %v232_v33, %v230_v32  ;;  %v37_v38 = vld [vmem:[%s1880_s0 + $0x10] sm:$0xff]  ;;  %v1667_v39 = vpack.c.bf16 %v231_v36, %v229_v35  ;;  %v38_v40 = vld [vmem:[%s1880_s0 + $0x18] sm:$0xff]  ;;  %v39_v41 = vld [vmem:[%s1880_s0 + $0x20] sm:$0xff] }
  0x1e   :  { %v40_v42 = vld [vmem:[%s1880_s0 + $0x28] sm:$0xff]  ;;  %v41_v43 = vld [vmem:[%s1880_s0 + $0x30] sm:$0xff]  ;;  %v42_v44 = vld [vmem:[%s1880_s0 + $0x38] sm:$0xff] }
  0x1f   :  { %1176 = vmatmul.mubr.msk.f32.vlgmr.msra.gmra.mrb[0].mxu1 %vm63_vm0, %v35_v24  ;;  %1270 = vmatpush1.bf16.msra.mxu0 %v1642_v27  ;;  %v51_v57 = vld [vmem:[%s1883_s3] sm:$0x3]  ;;  %s1557_s3 = smov [#allocation6]  }
  0x20   :  { %1218 = vmatpush1.bf16.msra.mxu1 %v1631_v18  ;;  %158 = vmatprep.mubr.f32.mxu1 %v1555_v0  ;;  %v1736_v59 = vrot.slane %v51_v57, %v59_v55  ;;  %v1740_v2 = vrot.slane %v51_v57, %v55_v1  ;;  %s1143_s13 = sshll.u32 %s1557_s3, 4  ;;  %s1144_s13 = int_to_ptr.vmem [resolvable:$true] %s1143_s13 }
  0x21   :  { %1220 = vmatprep.subr.bf16.mxu1 %v1633_v21  ;;  %1272 = vmatprep.subr.bf16.mxu0 %v1645_v30  ;;  %s1502_s16 = scalar_lea.vmem %s1144_s13, 1024  ;;  %p1507_p9 = scmp.lt.s32.totalorder %s1144_s13, %s1144_s13 }
  0x22   :  { %p1503_p8 = scmp.ne.s32.totalorder %s1144_s13, %s1502_s16  ;;  %p1508_p10 = scmp.lt.s32.totalorder %s1502_s16, %s1502_s16 }
  0x23   :  { %1177 = vmatmul.mubr.msk.f32.gmra.mrb[2].mxu1 %vm63_vm0, %v36_v31  ;;  %1274 = vmatpush1.bf16.msra.mxu0 %v1654_v34 }
  0x24   :  { %164 = vmatprep.mubr.f32.mxu1 %v1555_v0  ;;  %1222 = vmatpush1.bf16.msra.mxu1 %v1642_v27  ;;  %p1509_p11 = por %p1508_p10, %p1507_p9 }
  0x25   :  { %1224 = vmatprep.subr.bf16.mxu1 %v1645_v30  ;;  %1276 = vmatprep.subr.bf16.mxu0 %v1658_v37 }
  0x26   :  { %p1510_p12 = pnand %p1509_p11, %p1503_p8 }
  0x27   :  { %1178 = vmatmul.mubr.msk.f32.gmra.mrb[4].mxu1 %vm63_vm0, %v37_v38  ;;  %1278 = vmatpush1.bf16.msra.mxu0 %v1667_v39 }
  0x28   :  { %170 = vmatprep.mubr.f32.mxu1 %v1555_v0  ;;  %1226 = vmatpush1.bf16.msra.mxu1 %v1654_v34 }
  0x29   :  { %1228 = vmatprep.subr.bf16.mxu1 %v1658_v37  ;;  %1280 = vmatprep.subr.bf16.mxu0 %v1629_v16 }
  0x2b   :  { %1179 = vmatmul.mubr.msk.f32.gmra.mrb[6].mxu1 %vm63_vm0, %v38_v40 }
  0x2c   :  { %176 = vmatprep.mubr.f32.mxu1 %v1555_v0  ;;  %1230 = vmatpush1.bf16.msra.mxu1 %v1667_v39 }
  0x2d   :  { %1232 = vmatprep.subr.bf16.mxu1 %v1629_v16 }
  0x2f   :  { %1180 = vmatmul.mubr.msk.f32.gmra.mrb[8].mxu1 %vm63_vm0, %v39_v41 }
  0x30   :  { %182 = vmatprep.mubr.f32.mxu1 %v1555_v0 }
  0x33   :  { %1181 = vmatmul.mubr.msk.f32.gmra.mrb[10].mxu1 %vm63_vm0, %v40_v42 }
  0x34   :  { %188 = vmatprep.mubr.f32.mxu1 %v1555_v0 }
  0x37   :  { %1182 = vmatmul.mubr.msk.f32.gmra.mrb[12].mxu1 %vm63_vm0, %v41_v43 }
  0x38   :  { %194 = vmatprep.mubr.f32.mxu1 %v1555_v0 }
  0x3b   :  { %1183 = vmatmul.mubr.msk.f32.gmra.mrb[14].mxu1 %vm63_vm0, %v42_v44 }
  0x3c   :  { %306 = vmatprep.mubr.f32.mxu1 %v1555_v0 }
  0x3f   :  { %307 = vmatmul.mubr.f32.vlgmr.msra.gmra.mrb[0].mxu1 %v1555_v0 }
  0x40   :  { %1234 = vmatpush1.bf16.msra.mxu1 %v1631_v18  ;;  %418 = vmatprep.mubr.f32.mxu1 %v1555_v0 }
  0x41   :  { %1236 = vmatprep.subr.bf16.mxu1 %v1633_v21 }
  0x44   :  { %1238 = vmatpush1.bf16.msra.mxu1 %v1642_v27 }
  0x45   :  { %1240 = vmatprep.subr.bf16.mxu1 %v1645_v30 }
  0x48   :  { %1242 = vmatpush1.bf16.msra.mxu1 %v1654_v34 }
  0x49   :  { %1244 = vmatprep.subr.bf16.mxu1 %v1658_v37 }
  0x4c   :  { %1246 = vmatpush1.bf16.msra.mxu1 %v1667_v39 }
  0x4d   :  { %1248 = vmatprep.subr.bf16.mxu1 %v1629_v16 }
  0xfe   :  { %v1713_v45 = vpop.f32.mrb[6].mxu1 }
  0xff   :  { %v1715_v46 = vpop.f32.mrb[7].mxu1 }
 0x102   :  { %v1717_v47 = vpop.f32.mrb[8].mxu1 }
 0x103   :  { %v1719_v48 = vpop.f32.mrb[9].mxu1 }
 0x106   :  { %v1721_v50 = vpop.f32.mrb[10].mxu1 }
 0x107   :  { %v1723_v51 = vpop.f32.mrb[11].mxu1 }
 0x10a   :  { %v1725_v53 = vpop.f32.mrb[12].mxu1 }
 0x10b   :  { %v1727_v54 = vpop.f32.mrb[13].mxu1 }
 0x10e   :  { %v1729_v56 = vpop.f32.mrb[14].mxu1 }
 0x10f   :  { %v1734_v58 = vpop.f32.mrb[15].mxu1 }
 0x112   :  { %v308_v60 = vpop.f32.mrb[0].mxu1 }
 0x113   :  { %v310_v61 = vpop.f32.mrb[1].mxu1  ;;  %v1343_v3 = vadd.f32 %v308_v60, %v1740_v2 }
 0x114   :  { %v1344_v62 = vadd.f32 %v310_v61, %v1736_v59 }
 0x115   :  { %v1184_v4 = vmul.f32 -1.442695, %v1343_v3 }
 0x116   :  { %1384 = vtanh.f32 %v1344_v62  ;;  %v1185_v14 = vmul.f32 -1.442695, %v1344_v62 }
 0x117   :  { %1386 = vpow2.f32 %v1184_v4 }
 0x120   :  { %v1385_v63 = vpop.eup %1384 }
 0x121   :  { %330 = vrot.lane.b32.xlu0 %v1385_v63, %s1556_s2  ;;  %v1387_v5 = vpop.eup %1386 }
 0x122   :  { %v321_v6 = vadd.f32 1.0, %v1387_v5 }
 0x124   :  { %1388 = vrcp.f32 %v321_v6 }
 0x12e   :  { %v1389_v7 = vpop.eup %1388 }
 0x12f   :  { %v328_v10 = vmul.f32 0.0, %v1389_v7 }
 0x193   :  { %v331_v8 = vpop.permute.xlu0 %330 }
 0x194   :  { %v333_v9 = vmul.f32 %v1389_v7, %v331_v8 }
 0x196   :  { %335 = vrot.lane.b32.xlu0 %v333_v9, %s1556_s2 }
 0x208   :  { %v336_v11 = vpop.permute.xlu0 %335 }
 0x209   :  { %v338_v12 = vadd.f32 %v336_v11, %v328_v10 }
 0x20b   :  { %1390 = vtanh.f32 %v338_v12 }
 0x20c   :  { %1392 = vpow2.f32 %v1185_v14 }
 0x215   :  { %v1391_v13 = vpop.eup %1390 }
 0x216   :  { %341 = vrot.lane.b32.xlu1 %v1391_v13, %s1556_s2  ;;  %v1393_v15 = vpop.eup %1392 }
 0x217   :  { %v322_v17 = vadd.f32 1.0, %v1393_v15 }
 0x219   :  { %1394 = vrcp.f32 %v322_v17 }
 0x223   :  { %v1395_v19 = vpop.eup %1394 }
 0x288   :  { %v342_v20 = vpop.permute.xlu1 %341 }
 0x289   :  { %v344_v22 = vmul.f32 %v1395_v19, %v342_v20 }
 0x28b   :  { %345 = vst.msk [vmem:[#allocation6] sm:$0xff] %vm238_vm1, %v344_v22  ;;  %1186 = vmatmul.mubr.msk.f32.vlgmr.msra.gmra.mrb[2].mxu1 %vm238_vm1, %v344_v22  ;;  %v173_v22 = vadd.f32 %v1713_v45, %v1740_v2 }
 0x28c   :  { %1250 = vmatpush1.bf16.msra.mxu1 %v1631_v18  ;;  %531 = vmatprep.mubr.f32.mxu1 %v1555_v0 }
 0x28d   :  { %1252 = vmatprep.subr.bf16.mxu1 %v1633_v21 }
 0x290   :  { %1254 = vmatpush1.bf16.msra.mxu1 %v1642_v27 }
 0x291   :  { %1256 = vmatprep.subr.bf16.mxu1 %v1645_v30 }
 0x294   :  { %1258 = vmatpush1.bf16.msra.mxu1 %v1654_v34 }
 0x295   :  { %1260 = vmatprep.subr.bf16.mxu1 %v1658_v37 }
 0x298   :  { %1262 = vmatpush1.bf16.msra.mxu1 %v1667_v39 }
 0x35e   :  { %v420_v23 = vpop.f32.mrb[2].mxu1 }
 0x35f   :  { %v422_v24 = vpop.f32.mrb[3].mxu1  ;;  %v1345_v28 = vadd.f32 %v420_v23, %v1740_v2  ;;  %v175_v23 = vadd.f32 %v1715_v46, %v1736_v59 }
 0x360   :  { %v1346_v25 = vadd.f32 %v422_v24, %v1736_v59 }
 0x361   :  { %v1187_v29 = vmul.f32 -1.442695, %v1345_v28 }
 0x362   :  { %1396 = vtanh.f32 %v1346_v25  ;;  %v1188_v43 = vmul.f32 -1.442695, %v1346_v25 }
 0x363   :  { %1398 = vpow2.f32 %v1187_v29 }
 0x36c   :  { %v1397_v26 = vpop.eup %1396 }
 0x36d   :  { %442 = vrot.lane.b32.xlu1 %v1397_v26, %s1556_s2  ;;  %v1399_v31 = vpop.eup %1398 }
 0x36e   :  { %v433_v32 = vadd.f32 1.0, %v1399_v31 }
 0x370   :  { %1400 = vrcp.f32 %v433_v32 }
 0x37a   :  { %v1401_v33 = vpop.eup %1400 }
 0x37b   :  { %v440_v38 = vmul.f32 %v1401_v33, %v338_v12 }
 0x3df   :  { %v443_v35 = vpop.permute.xlu1 %442 }
 0x3e0   :  { %v445_v36 = vmul.f32 %v1401_v33, %v443_v35 }
 0x3e2   :  { %447 = vrot.lane.b32.xlu0 %v445_v36, %s1556_s2 }
 0x454   :  { %v448_v40 = vpop.permute.xlu0 %447 }
 0x455   :  { %v450_v41 = vadd.f32 %v448_v40, %v440_v38 }
 0x457   :  { %1402 = vtanh.f32 %v450_v41 }
 0x458   :  { %1404 = vpow2.f32 %v1188_v43 }
 0x461   :  { %v1403_v42 = vpop.eup %1402 }
 0x462   :  { %453 = vrot.lane.b32.xlu1 %v1403_v42, %s1556_s2  ;;  %v1405_v44 = vpop.eup %1404 }
 0x463   :  { %v434_v49 = vadd.f32 1.0, %v1405_v44 }
 0x465   :  { %1406 = vrcp.f32 %v434_v49 }
 0x46f   :  { %v1407_v52 = vpop.eup %1406 }
 0x4d4   :  { %v454_v55 = vpop.permute.xlu1 %453 }
 0x4d5   :  { %v456_v57 = vmul.f32 %v1407_v52, %v454_v55 }
 0x4d7   :  { %458 = vst.msk [vmem:[#allocation6 + $0x8] sm:$0xff] %vm238_vm1, %v456_v57  ;;  %1189 = vmatmul.mubr.msk.f32.vlgmr.msra.gmra.mrb[4].mxu1 %vm238_vm1, %v456_v57  ;;  %v179_v57 = vadd.f32 %v1717_v47, %v1740_v2 }
 0x5aa   :  { %v533_v60 = vpop.f32.mrb[4].mxu1 }
 0x5ab   :  { %v535_v61 = vpop.f32.mrb[5].mxu1  ;;  %v1347_v1 = vadd.f32 %v533_v60, %v1740_v2  ;;  %v181_v60 = vadd.f32 %v1719_v48, %v1736_v59 }
 0x5ac   :  { %v1348_v62 = vadd.f32 %v535_v61, %v1736_v59 }
 0x5ad   :  { %v1190_v3 = vmul.f32 -1.442695, %v1347_v1 }
 0x5ae   :  { %1408 = vtanh.f32 %v1348_v62  ;;  %v1191_v13 = vmul.f32 -1.442695, %v1348_v62 }
 0x5af   :  { %1410 = vpow2.f32 %v1190_v3 }
 0x5b8   :  { %v1409_v63 = vpop.eup %1408 }
 0x5b9   :  { %555 = vrot.lane.b32.xlu0 %v1409_v63, %s1556_s2  ;;  %v1411_v4 = vpop.eup %1410 }
 0x5ba   :  { %v546_v5 = vadd.f32 1.0, %v1411_v4 }
 0x5bc   :  { %1412 = vrcp.f32 %v546_v5 }
 0x5c6   :  { %v1413_v6 = vpop.eup %1412 }
 0x5c7   :  { %v553_v9 = vmul.f32 %v1413_v6, %v450_v41 }
 0x62b   :  { %v556_v7 = vpop.permute.xlu0 %555 }
 0x62c   :  { %v558_v8 = vmul.f32 %v1413_v6, %v556_v7 }
 0x62e   :  { %560 = vrot.lane.b32.xlu1 %v558_v8, %s1556_s2 }
 0x6a0   :  { %v561_v10 = vpop.permute.xlu1 %560 }
 0x6a1   :  { %v563_v11 = vadd.f32 %v561_v10, %v553_v9 }
 0x6a3   :  { %1414 = vtanh.f32 %v563_v11 }
 0x6a4   :  { %1416 = vpow2.f32 %v1191_v13 }
 0x6ad   :  { %v1415_v12 = vpop.eup %1414 }
 0x6ae   :  { %566 = vrot.lane.b32.xlu0 %v1415_v12, %s1556_s2  ;;  %v1417_v14 = vpop.eup %1416 }
 0x6af   :  { %v547_v15 = vadd.f32 1.0, %v1417_v14 }
 0x6b1   :  { %1418 = vrcp.f32 %v547_v15 }
 0x6bb   :  { %v1419_v17 = vpop.eup %1418 }
 0x720   :  { %v567_v19 = vpop.permute.xlu0 %566 }
 0x721   :  { %v569_v20 = vmul.f32 %v1419_v17, %v567_v19 }
 0x723   :  { %571 = vst.msk [vmem:[#allocation6 + $0x10] sm:$0xff] %vm238_vm1, %v569_v20  ;;  %1192 = vmatmul.mubr.msk.f32.vlgmr.msra.gmra.mrb[0].mxu0 %vm238_vm1, %v569_v20  ;;  %v185_v20 = vadd.f32 %v1721_v50, %v1740_v2 }
 0x724   :  { %1282 = vmatpush1.bf16.msra.mxu0 %v1631_v18  ;;  %757 = vmatprep.mubr.f32.mxu0 %v1555_v0 }
 0x725   :  { %1284 = vmatprep.subr.bf16.mxu0 %v1633_v21 }
 0x728   :  { %1286 = vmatpush1.bf16.msra.mxu0 %v1642_v27 }
 0x729   :  { %1288 = vmatprep.subr.bf16.mxu0 %v1645_v30 }
 0x72c   :  { %1290 = vmatpush1.bf16.msra.mxu0 %v1654_v34 }
 0x72d   :  { %1292 = vmatprep.subr.bf16.mxu0 %v1658_v37 }
 0x730   :  { %1294 = vmatpush1.bf16.msra.mxu0 %v1667_v39 }
 0x731   :  { %1296 = vmatprep.subr.bf16.mxu0 %v1629_v16 }
 0x7f6   :  { %v646_v24 = vpop.f32.mrb[0].mxu0 }
 0x7f7   :  { %v651_v25 = vadd.f32 %v646_v24, %v173_v22  ;;  %v648_v26 = vpop.f32.mrb[1].mxu0  ;;  %v187_v22 = vadd.f32 %v1723_v51, %v1736_v59 }
 0x7f8   :  { %v652_v28 = vadd.f32 %v648_v26, %v175_v23 }
 0x7f9   :  { %v1193_v31 = vmul.f32 -1.442695, %v651_v25 }
 0x7fa   :  { %1420 = vtanh.f32 %v652_v28  ;;  %v1194_v42 = vmul.f32 -1.442695, %v652_v28 }
 0x7fb   :  { %1422 = vpow2.f32 %v1193_v31 }
 0x804   :  { %v1421_v29 = vpop.eup %1420 }
 0x805   :  { %668 = vrot.lane.b32.xlu1 %v1421_v29, %s1556_s2  ;;  %v1423_v32 = vpop.eup %1422 }
 0x806   :  { %v659_v33 = vadd.f32 1.0, %v1423_v32 }
 0x808   :  { %1424 = vrcp.f32 %v659_v33 }
 0x812   :  { %v1425_v35 = vpop.eup %1424 }
 0x813   :  { %v666_v45 = vmul.f32 %v1425_v35, %v563_v11 }
 0x877   :  { %v669_v36 = vpop.permute.xlu1 %668 }
 0x878   :  { %v671_v38 = vmul.f32 %v1425_v35, %v669_v36 }
 0x87a   :  { %673 = vrot.lane.b32.xlu0 %v671_v38, %s1556_s2 }
 0x8ec   :  { %v674_v46 = vpop.permute.xlu0 %673 }
 0x8ed   :  { %v676_v40 = vadd.f32 %v674_v46, %v666_v45 }
 0x8ef   :  { %1426 = vtanh.f32 %v676_v40 }
 0x8f0   :  { %1428 = vpow2.f32 %v1194_v42 }
 0x8f9   :  { %v1427_v41 = vpop.eup %1426 }
 0x8fa   :  { %679 = vrot.lane.b32.xlu1 %v1427_v41, %s1556_s2  ;;  %v1429_v43 = vpop.eup %1428 }
 0x8fb   :  { %v660_v44 = vadd.f32 1.0, %v1429_v43 }
 0x8fd   :  { %1430 = vrcp.f32 %v660_v44  ;;  %v191_v44 = vadd.f32 %v1725_v53, %v1740_v2 }
 0x907   :  { %v1431_v49 = vpop.eup %1430 }
 0x96c   :  { %v680_v52 = vpop.permute.xlu1 %679 }
 0x96d   :  { %v682_v55 = vmul.f32 %v1431_v49, %v680_v52 }
 0x96f   :  { %684 = vst.msk [vmem:[#allocation6 + $0x18] sm:$0xff] %vm238_vm1, %v682_v55  ;;  %1195 = vmatmul.mubr.msk.f32.vlgmr.msra.gmra.mrb[2].mxu0 %vm238_vm1, %v682_v55 }
 0x970   :  { %1298 = vmatpush1.bf16.msra.mxu0 %v1631_v18  ;;  %870 = vmatprep.mubr.f32.mxu0 %v1555_v0 }
 0x971   :  { %1300 = vmatprep.subr.bf16.mxu0 %v1633_v21 }
 0x974   :  { %1302 = vmatpush1.bf16.msra.mxu0 %v1642_v27 }
 0x975   :  { %1304 = vmatprep.subr.bf16.mxu0 %v1645_v30 }
 0x978   :  { %1306 = vmatpush1.bf16.msra.mxu0 %v1654_v34 }
 0x979   :  { %1308 = vmatprep.subr.bf16.mxu0 %v1658_v37 }
 0x97c   :  { %1310 = vmatpush1.bf16.msra.mxu0 %v1667_v39 }
 0x97d   :  { %1312 = vmatprep.subr.bf16.mxu0 %v1629_v16 }
 0xa42   :  { %v759_v61 = vpop.f32.mrb[2].mxu0 }
 0xa43   :  { %v764_v62 = vadd.f32 %v759_v61, %v179_v57  ;;  %v761_v63 = vpop.f32.mrb[3].mxu0 }
 0xa44   :  { %v765_v1 = vadd.f32 %v761_v63, %v181_v60 }
 0xa45   :  { %v1196_v4 = vmul.f32 -1.442695, %v764_v62 }
 0xa46   :  { %1432 = vtanh.f32 %v765_v1  ;;  %v1197_v12 = vmul.f32 -1.442695, %v765_v1 }
 0xa47   :  { %1434 = vpow2.f32 %v1196_v4 }
 0xa50   :  { %v1433_v3 = vpop.eup %1432 }
 0xa51   :  { %781 = vrot.lane.b32.xlu0 %v1433_v3, %s1556_s2  ;;  %v1435_v5 = vpop.eup %1434 }
 0xa52   :  { %v772_v6 = vadd.f32 1.0, %v1435_v5 }
 0xa54   :  { %1436 = vrcp.f32 %v772_v6  ;;  %v197_v6 = vadd.f32 %v1729_v56, %v1740_v2 }
 0xa5e   :  { %v1437_v7 = vpop.eup %1436 }
 0xa5f   :  { %v779_v47 = vmul.f32 %v1437_v7, %v676_v40 }
 0xac3   :  { %v782_v8 = vpop.permute.xlu0 %781 }
 0xac4   :  { %v784_v9 = vmul.f32 %v1437_v7, %v782_v8  ;;  %v199_v7 = vadd.f32 %v1734_v58, %v1736_v59 }
 0xac6   :  { %786 = vrot.lane.b32.xlu1 %v784_v9, %s1556_s2 }
 0xb38   :  { %v787_v48 = vpop.permute.xlu1 %786 }
 0xb39   :  { %v789_v10 = vadd.f32 %v787_v48, %v779_v47 }
 0xb3b   :  { %1438 = vtanh.f32 %v789_v10 }
 0xb3c   :  { %1440 = vpow2.f32 %v1197_v12 }
 0xb45   :  { %v1439_v11 = vpop.eup %1438 }
 0xb46   :  { %792 = vrot.lane.b32.xlu0 %v1439_v11, %s1556_s2  ;;  %v1441_v13 = vpop.eup %1440 }
 0xb47   :  { %v773_v14 = vadd.f32 1.0, %v1441_v13 }
 0xb49   :  { %1442 = vrcp.f32 %v773_v14 }
 0xb53   :  { %v1443_v15 = vpop.eup %1442 }
 0xbb8   :  { %v793_v17 = vpop.permute.xlu0 %792 }
 0xbb9   :  { %v795_v19 = vmul.f32 %v1443_v15, %v793_v17 }
 0xbbb   :  { %797 = vst.msk [vmem:[#allocation6 + $0x20] sm:$0xff] %vm238_vm1, %v795_v19  ;;  %1198 = vmatmul.mubr.msk.f32.vlgmr.msra.gmra.mrb[4].mxu0 %vm238_vm1, %v795_v19 }
 0xbbc   :  { %1314 = vmatpush1.bf16.msra.mxu0 %v1631_v18  ;;  %983 = vmatprep.mubr.f32.mxu0 %v1555_v0 }
 0xbbd   :  { %1316 = vmatprep.subr.bf16.mxu0 %v1633_v21 }
 0xbc0   :  { %1318 = vmatpush1.bf16.msra.mxu0 %v1642_v27 }
 0xbc1   :  { %1320 = vmatprep.subr.bf16.mxu0 %v1645_v30 }
 0xbc4   :  { %1322 = vmatpush1.bf16.msra.mxu0 %v1654_v34 }
 0xbc5   :  { %1324 = vmatprep.subr.bf16.mxu0 %v1658_v37 }
 0xbc8   :  { %1326 = vmatpush1.bf16.msra.mxu0 %v1667_v39 }
 0xbc9   :  { %1328 = vmatprep.subr.bf16.mxu0 %v1629_v16 }
 0xc8e   :  { %v872_v23 = vpop.f32.mrb[4].mxu0 }
 0xc8f   :  { %v877_v24 = vadd.f32 %v872_v23, %v185_v20  ;;  %v874_v25 = vpop.f32.mrb[5].mxu0 }
 0xc90   :  { %v878_v26 = vadd.f32 %v874_v25, %v187_v22 }
 0xc91   :  { %v1199_v29 = vmul.f32 -1.442695, %v877_v24 }
 0xc92   :  { %1444 = vtanh.f32 %v878_v26  ;;  %v1200_v45 = vmul.f32 -1.442695, %v878_v26 }
 0xc93   :  { %1446 = vpow2.f32 %v1199_v29 }
 0xc9c   :  { %v1445_v28 = vpop.eup %1444 }
 0xc9d   :  { %894 = vrot.lane.b32.xlu1 %v1445_v28, %s1556_s2  ;;  %v1447_v31 = vpop.eup %1446 }
 0xc9e   :  { %v885_v32 = vadd.f32 1.0, %v1447_v31 }
 0xca0   :  { %1448 = vrcp.f32 %v885_v32 }
 0xcaa   :  { %v1449_v16 = vpop.eup %1448 }
 0xcab   :  { %v892_v50 = vmul.f32 %v1449_v16, %v789_v10 }
 0xd0f   :  { %v895_v33 = vpop.permute.xlu1 %894 }
 0xd10   :  { %v897_v35 = vmul.f32 %v1449_v16, %v895_v33 }
 0xd12   :  { %899 = vrot.lane.b32.xlu0 %v897_v35, %s1556_s2 }
 0xd84   :  { %v900_v51 = vpop.permute.xlu0 %899 }
 0xd85   :  { %v902_v36 = vadd.f32 %v900_v51, %v892_v50 }
 0xd87   :  { %1450 = vtanh.f32 %v902_v36 }
 0xd88   :  { %1452 = vpow2.f32 %v1200_v45 }
 0xd91   :  { %v1451_v38 = vpop.eup %1450 }
 0xd92   :  { %905 = vrot.lane.b32.xlu1 %v1451_v38, %s1556_s2  ;;  %v1453_v46 = vpop.eup %1452 }
 0xd93   :  { %v886_v40 = vadd.f32 1.0, %v1453_v46 }
 0xd95   :  { %1454 = vrcp.f32 %v886_v40 }
 0xd9f   :  { %v1455_v41 = vpop.eup %1454 }
 0xe04   :  { %v906_v42 = vpop.permute.xlu1 %905 }
 0xe05   :  { %v908_v43 = vmul.f32 %v1455_v41, %v906_v42 }
 0xe07   :  { %910 = vst.msk [vmem:[#allocation6 + $0x28] sm:$0xff] %vm238_vm1, %v908_v43  ;;  %1201 = vmatmul.mubr.msk.f32.vlgmr.msra.gmra.mrb[6].mxu0 %vm238_vm1, %v908_v43 }
 0xe08   :  { %1330 = vmatpush1.bf16.msra.mxu0 %v1631_v18  ;;  %1096 = vmatprep.mubr.f32.mxu0 %v1555_v0  ;;  %v193_v18 = vadd.f32 %v1727_v54, %v1736_v59 }
 0xe09   :  { %1332 = vmatprep.subr.bf16.mxu0 %v1633_v21 }
 0xe0c   :  { %1334 = vmatpush1.bf16.msra.mxu0 %v1642_v27 }
 0xe0d   :  { %1336 = vmatprep.subr.bf16.mxu0 %v1645_v30 }
 0xe10   :  { %1338 = vmatpush1.bf16.msra.mxu0 %v1654_v34 }
 0xe11   :  { %1340 = vmatprep.subr.bf16.mxu0 %v1658_v37 }
 0xe14   :  { %1342 = vmatpush1.bf16.msra.mxu0 %v1667_v39 }
 0xeda   :  { %v985_v49 = vpop.f32.mrb[6].mxu0 }
 0xedb   :  { %v990_v0 = vadd.f32 %v985_v49, %v191_v44  ;;  %v987_v52 = vpop.f32.mrb[7].mxu0 }
 0xedc   :  { %v991_v21 = vadd.f32 %v987_v52, %v193_v18 }
 0xedd   :  { %v1202_v30 = vmul.f32 -1.442695, %v990_v0 }
 0xede   :  { %1456 = vtanh.f32 %v991_v21  ;;  %v1203_v62 = vmul.f32 -1.442695, %v991_v21 }
 0xedf   :  { %1458 = vpow2.f32 %v1202_v30 }
 0xee8   :  { %v1457_v27 = vpop.eup %1456 }
 0xee9   :  { %1007 = vrot.lane.b32.xlu0 %v1457_v27, %s1556_s2  ;;  %v1459_v34 = vpop.eup %1458 }
 0xeea   :  { %v998_v37 = vadd.f32 1.0, %v1459_v34 }
 0xeec   :  { %1460 = vrcp.f32 %v998_v37 }
 0xef6   :  { %v1461_v39 = vpop.eup %1460 }
 0xef7   :  { %v1005_v53 = vmul.f32 %v1461_v39, %v902_v36 }
 0xf5b   :  { %v1008_v55 = vpop.permute.xlu0 %1007 }
 0xf5c   :  { %v1010_v57 = vmul.f32 %v1461_v39, %v1008_v55 }
 0xf5e   :  { %1012 = vrot.lane.b32.xlu1 %v1010_v57, %s1556_s2 }
 0xfd0   :  { %v1013_v54 = vpop.permute.xlu1 %1012 }
 0xfd1   :  { %v1015_v60 = vadd.f32 %v1013_v54, %v1005_v53 }
 0xfd3   :  { %1462 = vtanh.f32 %v1015_v60 }
 0xfd4   :  { %1464 = vpow2.f32 %v1203_v62 }
 0xfdd   :  { %v1463_v61 = vpop.eup %1462 }
 0xfde   :  { %1018 = vrot.lane.b32.xlu0 %v1463_v61, %s1556_s2  ;;  %v1465_v63 = vpop.eup %1464 }
 0xfdf   :  { %v999_v1 = vadd.f32 1.0, %v1465_v63 }
 0xfe1   :  { %1466 = vrcp.f32 %v999_v1 }
 0xfeb   :  { %v1467_v3 = vpop.eup %1466 }
0x1050   :  { %v1019_v4 = vpop.permute.xlu0 %1018 }
0x1051   :  { %v1021_v5 = vmul.f32 %v1467_v3, %v1019_v4 }
0x1053   :  { %1023 = vst.msk [vmem:[#allocation6 + $0x30] sm:$0xff] %vm238_vm1, %v1021_v5  ;;  %1204 = vmatmul.mubr.msk.f32.vlgmr.msra.gmra.mrb[8].mxu0 %vm238_vm1, %v1021_v5 }
0x1126   :  { %v1098_v8 = vpop.f32.mrb[8].mxu0 }
0x1127   :  { %v1103_v9 = vadd.f32 %v1098_v8, %v197_v6  ;;  %v1100_v47 = vpop.f32.mrb[9].mxu0 }
0x1128   :  { %v1104_v48 = vadd.f32 %v1100_v47, %v199_v7 }
0x1129   :  { %v1205_v11 = vmul.f32 -1.442695, %v1103_v9 }
0x112a   :  { %1468 = vtanh.f32 %v1104_v48  ;;  %v1206_v19 = vmul.f32 -1.442695, %v1104_v48 }
0x112b   :  { %1470 = vpow2.f32 %v1205_v11 }
0x1134   :  { %v1469_v10 = vpop.eup %1468 }
0x1135   :  { %1120 = vrot.lane.b32.xlu1 %v1469_v10, %s1556_s2  ;;  %v1471_v12 = vpop.eup %1470 }
0x1136   :  { %v1111_v13 = vadd.f32 1.0, %v1471_v12 }
0x1138   :  { %1472 = vrcp.f32 %v1111_v13 }
0x1142   :  { %v1473_v14 = vpop.eup %1472 }
0x1143   :  { %v1118_v56 = vmul.f32 %v1473_v14, %v1015_v60 }
0x11a7   :  { %v1121_v15 = vpop.permute.xlu1 %1120 }
0x11a8   :  { %v1123_v17 = vmul.f32 %v1473_v14, %v1121_v15 }
0x11aa   :  { %1125 = vrot.lane.b32.xlu0 %v1123_v17, %s1556_s2 }
0x121c   :  { %v1126_v58 = vpop.permute.xlu0 %1125 }
0x121d   :  { %v1128_v59 = vadd.f32 %v1126_v58, %v1118_v56 }
0x121f   :  { %1474 = vtanh.f32 %v1128_v59 }
0x1220   :  { %1476 = vpow2.f32 %v1206_v19 }
0x1229   :  { %v1475_v2 = vpop.eup %1474 }
0x122a   :  { %1131 = vrot.lane.b32.xlu1 %v1475_v2, %s1556_s2  ;;  %v1477_v20 = vpop.eup %1476 }
0x122b   :  { %v1112_v22 = vadd.f32 1.0, %v1477_v20 }
0x122d   :  { %1478 = vrcp.f32 %v1112_v22 }
0x1237   :  { %v1479_v23 = vpop.eup %1478 }
0x129c   :  { %v1132_v24 = vpop.permute.xlu1 %1131 }
0x129d   :  { %v1134_v25 = vmul.f32 %v1479_v23, %v1132_v24 }
0x129f   :  { %1136 = vst.msk [vmem:[#allocation6 + $0x38] sm:$0xff] %vm238_vm1, %v1134_v25  ;;  %1137 = vst.msk [vmem:[#allocation7] sm:$0xff] %vm238_vm1, %v1134_v25 }
0x12a0   :  { %1513 = shalt.err (!%p1510_p12)
}
0x12a1   :  { %s1514_s19 = scalar_lea.hbm %s1884_s4, 1024 }
0x12a2   :  { %p1515_p13 = scmp.ne.s32.totalorder %s1884_s4, %s1514_s19  ;;  %p1518_p0 = scmp.lt.u32.totalorder %s1514_s19, %s1884_s4 }
0x12a4   :  { %p1520_p1 = pnand %p1518_p0, %p1515_p13 }
0x12a6   :  { %1523 = shalt.err (!%p1520_p1)
}
0x12a7   :  { %s1559_s23 = smov 128   ;;  %s1560_s24 = smov 8  }
0x12a8   :  { %1149 = dma.vmem_to_hbm [thread:$0]  %s1144_s13, 1024, %s1884_s4, [#allocation5], %s1559_s23, %s1559_s23, %s1560_s24  }
0x12a9   :  { %s1524_s27 = scalar_lea.vmem %s1847_s15, 128  ;;  %p1529_p3 = scmp.lt.s32.totalorder %s1847_s15, %s1847_s15 }
0x12aa   :  { %p1525_p2 = scmp.ne.s32.totalorder %s1847_s15, %s1524_s27  ;;  %p1530_p4 = scmp.lt.s32.totalorder %s1524_s27, %s1524_s27 }
0x12ac   :  { %p1531_p5 = por %p1530_p4, %p1529_p3 }
0x12ae   :  { %p1532_p6 = pnand %p1531_p5, %p1525_p2 }
0x12b0   :  { %1535 = shalt.err (!%p1532_p6)
}
0x12b1   :  { %s1536_s30 = scalar_lea.hbm %s1885_s5, 128 }
0x12b2   :  { %p1537_p7 = scmp.ne.s32.totalorder %s1885_s5, %s1536_s30  ;;  %p1540_p8 = scmp.lt.u32.totalorder %s1536_s30, %s1885_s5 }
0x12b4   :  { %p1542_p9 = pnand %p1540_p8, %p1537_p7 }
0x12b6   :  { %1545 = shalt.err (!%p1542_p9)
}
0x12b7   :  { %1159 = dma.vmem_to_hbm [thread:$0]  %s1847_s15, 128, %s1885_s5, [#allocation8]  }
0x12b8   :  { %1548 = dma.done.wait [#allocation5], 1024  }
0x12b9   :  { %1549 = vsyncadd [#allocation5], 4294966272 }
0x12ba   :  { %1550 = dma.done.wait [#allocation8], 128  }
0x12bb   :  { %1551 = vsyncadd [#allocation8], 4294967168 }
0x12bc   :  { %1166 = vsyncpa [#allocation4], 1 }
0x12bd   :  { %1167 = vsyncpa [#allocation5], 1 }
0x12be   :  { %1168 = vsyncpa [#allocation8], 1 }

</bundles_post_ra>
